<compile_context>
chip_gen: v7x
topology: tpu7x:2x2x1
jax: 0.10.0
libtpu: 0.0.40
codegen_flags: <defaults>
</compile_context>

<pallas_src>
import functools

import jax
import jax.numpy as jnp
from jax import lax
from jax.experimental import pallas as pl
from jax.experimental.pallas import tpu as pltpu


def attention_kernel(x_ref, wq_ref, wk_ref, wv_ref, wp_ref, bproj_ref,
                     o_ref, acc_ref, *, compute_dtype):
    # x_ref:  (1, N, C) in compute_dtype (bf16)
    # wq/wk/wv_ref: (1, C, D)  (softmax scale already folded into wq)
    # wp_ref: (1, D, C)        (this head's rows of the output projection)
    # bproj_ref: (1, C) f32
    # o_ref:  (1, N, C)        acc_ref: (N, C) f32 scratch (resident across h)
    h = pl.program_id(1)

    @pl.when(h == 0)
    def _init():
        # Fold the projection bias into the accumulator init.
        acc_ref[...] = jnp.broadcast_to(bproj_ref[...], acc_ref.shape)

    x = x_ref[0]                                 # (N, C) bf16 MXU operand
    wq = wq_ref[0]                               # (C, D)
    wk = wk_ref[0]
    wv = wv_ref[0]
    wp = wp_ref[0]                               # (D, C)

    # Per-head projections, f32 accumulation on the MXU.
    q = jnp.dot(x, wq, preferred_element_type=jnp.float32)   # (N, D) (scaled)
    k = jnp.dot(x, wk, preferred_element_type=jnp.float32)   # (N, D)
    v = jnp.dot(x, wv, preferred_element_type=jnp.float32)   # (N, D)

    # Scores: contract last dims of q and k directly (no materialized k.T).
    s = lax.dot_general(
        q.astype(compute_dtype), k.astype(compute_dtype),
        dimension_numbers=(((1,), (1,)), ((), ())),
        preferred_element_type=jnp.float32)                   # (N, N) f32

    # Softmax in f32 (VPU/EUP); attn_drop(p=0) is identity.
    s = s - jnp.max(s, axis=-1, keepdims=True)
    p = jnp.exp(s)
    p = p * pl.reciprocal(jnp.sum(p, axis=-1, keepdims=True), approx=True)

    out_h = jnp.dot(p.astype(compute_dtype), v.astype(compute_dtype),
                    preferred_element_type=jnp.float32)       # (N, D)

    # This head's contribution to the output projection, accumulated in VMEM.
    acc_ref[...] += jnp.dot(out_h.astype(compute_dtype), wp,
                            preferred_element_type=jnp.float32)  # (N, C)

    @pl.when(h == pl.num_programs(1) - 1)
    def _finalize():
        o_ref[0] = acc_ref[...].astype(o_ref.dtype)


def attention_forward(x, g_info, w_qkv_t, w_proj_t, b_proj, num_heads,
                      compute_dtype=jnp.bfloat16):
    """x: (B, N, C); w_qkv_t: (C, 3C); w_proj_t: (C, C); b_proj: (C,)."""
    B, N, C = x.shape
    H = num_heads
    D = C // H
    scale = D ** (-0.5)
    # g_info[0] is read but unused in the torch forward; mirror that here.
    _ = g_info[0]

    # --- One-time weight prep (would be hoisted/cached in a real model) ---
    # (C, 3C) -> (C, 3, H, D) -> (3, H, C, D); fold the softmax scale into W_q.
    w = w_qkv_t.reshape(C, 3, H, D).transpose(1, 2, 0, 3)
    w_q = (w[0] * scale).astype(compute_dtype)                # (H, C, D)
    w_k = w[1].astype(compute_dtype)                          # (H, C, D)
    w_v = w[2].astype(compute_dtype)                          # (H, C, D)
    w_p = w_proj_t.reshape(H, D, C).astype(compute_dtype)     # per-head rows
    b_p = b_proj.reshape(1, C).astype(jnp.float32)
    x_c = x.astype(compute_dtype)                             # halve x DMA bytes

    kernel = functools.partial(attention_kernel, compute_dtype=compute_dtype)
    out = pl.pallas_call(
        kernel,
        out_shape=jax.ShapeDtypeStruct((B, N, C), x.dtype),
        grid=(B, H),
        in_specs=[
            pl.BlockSpec((1, N, C), lambda b, h: (b, 0, 0)),   # x (invariant in h)
            pl.BlockSpec((1, C, D), lambda b, h: (h, 0, 0)),   # W_q (scaled)
            pl.BlockSpec((1, C, D), lambda b, h: (h, 0, 0)),   # W_k
            pl.BlockSpec((1, C, D), lambda b, h: (h, 0, 0)),   # W_v
            pl.BlockSpec((1, D, C), lambda b, h: (h, 0, 0)),   # W_proj rows
            pl.BlockSpec((1, C), lambda b, h: (0, 0)),         # proj bias
        ],
        out_specs=pl.BlockSpec((1, N, C), lambda b, h: (b, 0, 0)),
        scratch_shapes=[pltpu.VMEM((N, C), jnp.float32)],
        compiler_params=pltpu.CompilerParams(
            dimension_semantics=("parallel", "arbitrary"),
            vmem_limit_bytes=48 * 1024 * 1024,
        ),
    )(x_c, w_q, w_k, w_v, w_p, b_p)
    return out, g_info[1:]


def _reference(x, g_info, w_qkv_t, w_proj_t, b_proj, num_heads):
    B, N, C = x.shape
    D = C // num_heads
    scale = D ** (-0.5)
    qkv = (x @ w_qkv_t).reshape(B, N, 3, num_heads, D).transpose(2, 0, 3, 1, 4)
    q, k, v = qkv[0] * scale, qkv[1], qkv[2]             # (B, H, N, D)
    attn = q @ jnp.swapaxes(k, -2, -1)
    attn = jax.nn.softmax(attn, axis=-1)
    y = (attn @ v).transpose(0, 2, 1, 3).reshape(B, N, C)
    y = y @ w_proj_t + b_proj
    return y, g_info[1:]


if __name__ == "__main__":
    B, N, C, H = 2, 8, 32, 8
    key = jax.random.PRNGKey(0)
    kx, kq, kp, kb, kg = jax.random.split(key, 5)

    x = jax.random.normal(kx, (B, N, C), dtype=jnp.float32)
    # torch nn.Linear weights are (out, in); store transposed as (in, out).
    w_qkv_t = jax.random.normal(kq, (C, 3 * C), dtype=jnp.float32) * 0.05
    w_proj_t = jax.random.normal(kp, (C, C), dtype=jnp.float32) * 0.05
    b_proj = jax.random.normal(kb, (C,), dtype=jnp.float32) * 0.05
    g_info = jax.random.normal(kg, (3, 4), dtype=jnp.float32)

    y, g_rest = attention_forward(x, g_info, w_qkv_t, w_proj_t, b_proj, H)
    jax.block_until_ready(y)

    y_ref, g_rest_ref = _reference(x, g_info, w_qkv_t, w_proj_t, b_proj, H)
    # bf16 MXU operands (f32 accumulate / f32 softmax) -> small drift vs f32 ref.
    assert jnp.allclose(y, y_ref, atol=1e-2, rtol=1e-2), "mismatch vs reference"
    assert g_rest.shape == g_rest_ref.shape == (2, 4)

    print("KERNEL_OK")
</pallas_src>

<mosaic_0001>
module attributes {stable_mosaic.version = 11 : i64} {
  func.func @attention_kernel(%arg0: i32, %arg1: i32, %arg2: memref<1x8x32xbf16, #tpu.memory_space<vmem>>, %arg3: memref<1x32x4xbf16, #tpu.memory_space<vmem>>, %arg4: memref<1x32x4xbf16, #tpu.memory_space<vmem>>, %arg5: memref<1x32x4xbf16, #tpu.memory_space<vmem>>, %arg6: memref<1x4x32xbf16, #tpu.memory_space<vmem>>, %arg7: memref<1x32xf32, #tpu.memory_space<vmem>>, %arg8: memref<1x8x32xf32, #tpu.memory_space<vmem>>, %arg9: memref<8x32xf32, #tpu.memory_space<vmem>>) attributes {dimension_semantics = [#tpu.dimension_semantics<parallel>, #tpu.dimension_semantics<arbitrary>], iteration_bounds = array<i64: 2, 8>, scalar_prefetch = 0 : i64, scratch_operands = 1 : i64, tpu.core_type = #tpu.core_type<tc>, window_params = [{transform_indices = @transform_0, window_bounds = array<i64: 1, 8, 32>}, {transform_indices = @transform_1, window_bounds = array<i64: 1, 32, 4>}, {transform_indices = @transform_2, window_bounds = array<i64: 1, 32, 4>}, {transform_indices = @transform_3, window_bounds = array<i64: 1, 32, 4>}, {transform_indices = @transform_4, window_bounds = array<i64: 1, 4, 32>}, {pipeline_mode = #tpu.pipeline_mode<synchronous>, transform_indices = @transform_5, window_bounds = array<i64: 1, 32>}, {transform_indices = @transform_6, window_bounds = array<i64: 1, 8, 32>}]} {
    %c0_i32 = arith.constant 0 : i32
    %0 = arith.cmpi eq, %arg1, %c0_i32 : i32
    %1 = arith.extui %0 : i1 to i32
    %c0_i32_0 = arith.constant 0 : i32
    %2 = arith.cmpi ne, %1, %c0_i32_0 : i32
    scf.if %2 {
      %c0_27 = arith.constant 0 : index
      %c0_28 = arith.constant 0 : index
      %40 = vector.load %arg7[%c0_27, %c0_28] : memref<1x32xf32, #tpu.memory_space<vmem>>, vector<1x32xf32>
      %41 = vector.shape_cast %40 : vector<1x32xf32> to vector<1x32xf32>
      %42 = vector.broadcast %41 : vector<1x32xf32> to vector<8x32xf32>
      %c0_29 = arith.constant 0 : index
      %c0_30 = arith.constant 0 : index
      %43 = vector.load %arg9[%c0_29, %c0_30] : memref<8x32xf32, #tpu.memory_space<vmem>>, vector<8x32xf32>
      tpu.vector_store %arg9[%c0_29, %c0_30], %42 {strides = array<i32>} : memref<8x32xf32, #tpu.memory_space<vmem>>, vector<8x32xf32>,
    } else {
    }
    %c0 = arith.constant 0 : index
    %c0_1 = arith.constant 0 : index
    %c0_2 = arith.constant 0 : index
    %3 = vector.load %arg2[%c0, %c0_1, %c0_2] : memref<1x8x32xbf16, #tpu.memory_space<vmem>>, vector<1x8x32xbf16>
    %4 = vector.shape_cast %3 : vector<1x8x32xbf16> to vector<8x32xbf16>
    %c0_3 = arith.constant 0 : index
    %c0_4 = arith.constant 0 : index
    %c0_5 = arith.constant 0 : index
    %5 = vector.load %arg3[%c0_3, %c0_4, %c0_5] : memref<1x32x4xbf16, #tpu.memory_space<vmem>>, vector<1x32x4xbf16>
    %6 = vector.shape_cast %5 : vector<1x32x4xbf16> to vector<32x4xbf16>
    %c0_6 = arith.constant 0 : index
    %c0_7 = arith.constant 0 : index
    %c0_8 = arith.constant 0 : index
    %7 = vector.load %arg4[%c0_6, %c0_7, %c0_8] : memref<1x32x4xbf16, #tpu.memory_space<vmem>>, vector<1x32x4xbf16>
    %8 = vector.shape_cast %7 : vector<1x32x4xbf16> to vector<32x4xbf16>
    %c0_9 = arith.constant 0 : index
    %c0_10 = arith.constant 0 : index
    %c0_11 = arith.constant 0 : index
    %9 = vector.load %arg5[%c0_9, %c0_10, %c0_11] : memref<1x32x4xbf16, #tpu.memory_space<vmem>>, vector<1x32x4xbf16>
    %10 = vector.shape_cast %9 : vector<1x32x4xbf16> to vector<32x4xbf16>
    %c0_12 = arith.constant 0 : index
    %c0_13 = arith.constant 0 : index
    %c0_14 = arith.constant 0 : index
    %11 = vector.load %arg6[%c0_12, %c0_13, %c0_14] : memref<1x4x32xbf16, #tpu.memory_space<vmem>>, vector<1x4x32xbf16>
    %12 = vector.shape_cast %11 : vector<1x4x32xbf16> to vector<4x32xbf16>
    %cst = arith.constant dense<0.000000e+00> : vector<8x4xf32>
    %13 = tpu.matmul %4, %6, %cst {dimension_numbers = #tpu.dot_dimension_numbers<[1], [0], [0], [1], [0, 0, 1, 1], [], []>} : vector<8x32xbf16>, vector<32x4xbf16>, vector<8x4xf32> -> vector<8x4xf32>
    %cst_15 = arith.constant dense<0.000000e+00> : vector<8x4xf32>
    %14 = tpu.matmul %4, %8, %cst_15 {dimension_numbers = #tpu.dot_dimension_numbers<[1], [0], [0], [1], [0, 0, 1, 1], [], []>} : vector<8x32xbf16>, vector<32x4xbf16>, vector<8x4xf32> -> vector<8x4xf32>
    %cst_16 = arith.constant dense<0.000000e+00> : vector<8x4xf32>
    %15 = tpu.matmul %4, %10, %cst_16 {dimension_numbers = #tpu.dot_dimension_numbers<[1], [0], [0], [1], [0, 0, 1, 1], [], []>} : vector<8x32xbf16>, vector<32x4xbf16>, vector<8x4xf32> -> vector<8x4xf32>
    %16 = arith.truncf %13 : vector<8x4xf32> to vector<8x4xbf16>
    %17 = arith.truncf %14 : vector<8x4xf32> to vector<8x4xbf16>
    %cst_17 = arith.constant dense<0.000000e+00> : vector<8x8xf32>
    %18 = tpu.matmul %16, %17, %cst_17 {dimension_numbers = #tpu.dot_dimension_numbers<[1], [1], [0], [0], [0, 0, 1, 0], [], []>} : vector<8x4xbf16>, vector<8x4xbf16>, vector<8x8xf32> -> vector<8x8xf32>
    %cst_18 = arith.constant dense<0xFF800000> : vector<8xf32>
    %19 = vector.multi_reduction <maximumf>, %18, %cst_18 [1] : vector<8x8xf32> to vector<8xf32>
    %20 = vector.shape_cast %19 : vector<8xf32> to vector<8x1xf32>
    %21 = vector.broadcast %20 : vector<8x1xf32> to vector<8x8xf32>
    %22 = arith.subf %18, %21 : vector<8x8xf32>
    %23 = math.exp %22 : vector<8x8xf32>
    %cst_19 = arith.constant dense<0.000000e+00> : vector<8xf32>
    %24 = vector.multi_reduction <add>, %23, %cst_19 [1] : vector<8x8xf32> to vector<8xf32>
    %25 = vector.shape_cast %24 : vector<8xf32> to vector<8x1xf32>
    %26 = tpu.reciprocal %25 {approx = true} : vector<8x1xf32> -> vector<8x1xf32>
    %27 = vector.broadcast %26 : vector<8x1xf32> to vector<8x8xf32>
    %28 = arith.mulf %23, %27 : vector<8x8xf32>
    %29 = arith.truncf %28 : vector<8x8xf32> to vector<8x8xbf16>
    %30 = arith.truncf %15 : vector<8x4xf32> to vector<8x4xbf16>
    %cst_20 = arith.constant dense<0.000000e+00> : vector<8x4xf32>
    %31 = tpu.matmul %29, %30, %cst_20 {dimension_numbers = #tpu.dot_dimension_numbers<[1], [0], [0], [1], [0, 0, 1, 1], [], []>} : vector<8x8xbf16>, vector<8x4xbf16>, vector<8x4xf32> -> vector<8x4xf32>
    %c0_21 = arith.constant 0 : index
    %c0_22 = arith.constant 0 : index
    %32 = vector.load %arg9[%c0_21, %c0_22] : memref<8x32xf32, #tpu.memory_space<vmem>>, vector<8x32xf32>
    %33 = arith.truncf %31 : vector<8x4xf32> to vector<8x4xbf16>
    %cst_23 = arith.constant dense<0.000000e+00> : vector<8x32xf32>
    %34 = tpu.matmul %33, %12, %cst_23 {dimension_numbers = #tpu.dot_dimension_numbers<[1], [0], [0], [1], [0, 0, 1, 1], [], []>} : vector<8x4xbf16>, vector<4x32xbf16>, vector<8x32xf32> -> vector<8x32xf32>
    %35 = arith.addf %32, %34 : vector<8x32xf32>
    %c0_24 = arith.constant 0 : index
    %c0_25 = arith.constant 0 : index
    %36 = vector.load %arg9[%c0_24, %c0_25] : memref<8x32xf32, #tpu.memory_space<vmem>>, vector<8x32xf32>
    tpu.vector_store %arg9[%c0_24, %c0_25], %35 {strides = array<i32>} : memref<8x32xf32, #tpu.memory_space<vmem>>, vector<8x32xf32>,
    %c7_i32 = arith.constant 7 : i32
    %37 = arith.cmpi eq, %arg1, %c7_i32 : i32
    %38 = arith.extui %37 : i1 to i32
    %c0_i32_26 = arith.constant 0 : i32
    %39 = arith.cmpi ne, %38, %c0_i32_26 : i32
    scf.if %39 {
      %c0_27 = arith.constant 0 : index
      %c0_28 = arith.constant 0 : index
      %40 = vector.load %arg9[%c0_27, %c0_28] : memref<8x32xf32, #tpu.memory_space<vmem>>, vector<8x32xf32>
      %c0_29 = arith.constant 0 : index
      %c0_30 = arith.constant 0 : index
      %c0_31 = arith.constant 0 : index
      %41 = vector.load %arg8[%c0_29, %c0_30, %c0_31] : memref<1x8x32xf32, #tpu.memory_space<vmem>>, vector<1x8x32xf32>
      %42 = vector.shape_cast %41 : vector<1x8x32xf32> to vector<8x32xf32>
      %43 = vector.shape_cast %40 : vector<8x32xf32> to vector<1x8x32xf32>
      tpu.vector_store %arg8[%c0_29, %c0_30, %c0_31], %43 {strides = array<i32>} : memref<1x8x32xf32, #tpu.memory_space<vmem>>, vector<1x8x32xf32>,
    } else {
    }
    return
  }
  func.func @transform_0(%arg0: i32, %arg1: i32) -> (i32, i32, i32) {
    %c0_i32 = arith.constant 0 : i32
    %c0_i32_0 = arith.constant 0 : i32
    %c0_i32_1 = arith.constant 0 : i32
    return %arg0, %c0_i32, %c0_i32_0 : i32, i32, i32
  }
  func.func @transform_1(%arg0: i32, %arg1: i32) -> (i32, i32, i32) {
    %c0_i32 = arith.constant 0 : i32
    %c0_i32_0 = arith.constant 0 : i32
    %c0_i32_1 = arith.constant 0 : i32
    return %arg1, %c0_i32, %c0_i32_0 : i32, i32, i32
  }
  func.func @transform_2(%arg0: i32, %arg1: i32) -> (i32, i32, i32) {
    %c0_i32 = arith.constant 0 : i32
    %c0_i32_0 = arith.constant 0 : i32
    %c0_i32_1 = arith.constant 0 : i32
    return %arg1, %c0_i32, %c0_i32_0 : i32, i32, i32
  }
  func.func @transform_3(%arg0: i32, %arg1: i32) -> (i32, i32, i32) {
    %c0_i32 = arith.constant 0 : i32
    %c0_i32_0 = arith.constant 0 : i32
    %c0_i32_1 = arith.constant 0 : i32
    return %arg1, %c0_i32, %c0_i32_0 : i32, i32, i32
  }
  func.func @transform_4(%arg0: i32, %arg1: i32) -> (i32, i32, i32) {
    %c0_i32 = arith.constant 0 : i32
    %c0_i32_0 = arith.constant 0 : i32
    %c0_i32_1 = arith.constant 0 : i32
    return %arg1, %c0_i32, %c0_i32_0 : i32, i32, i32
  }
  func.func @transform_5(%arg0: i32, %arg1: i32) -> (i32, i32) {
    %c0_i32 = arith.constant 0 : i32
    %c0_i32_0 = arith.constant 0 : i32
    %c0_i32_1 = arith.constant 0 : i32
    return %c0_i32, %c0_i32_0 : i32, i32
  }
  func.func @transform_6(%arg0: i32, %arg1: i32) -> (i32, i32, i32) {
    %c0_i32 = arith.constant 0 : i32
    %c0_i32_0 = arith.constant 0 : i32
    %c0_i32_1 = arith.constant 0 : i32
    return %arg0, %c0_i32, %c0_i32_0 : i32, i32, i32
  }
}

</mosaic_0001>

<bundles_post_ra>
// kernel: tpu_custom_call.1
= control target key start
LH: loop header
LB: loop body
LE: loop exit
PB: predicated region body
PF: predicated region fallthrough
CT: control target
= control target key end

     0   :  { %11 = vsyncpa [#allocation4], 0  ;;  %s1313_s0 = inlined_call_operand.vmem [shape: bf16[2,8,32], index: 0, kind: input, shape index: {}]   ;;  %s1314_s1 = inlined_call_operand.vmem [shape: bf16[8,32,4], index: 1, kind: input, shape index: {}]   ;;  %s1315_s2 = inlined_call_operand.vmem [shape: bf16[8,32,4], index: 2, kind: input, shape index: {}]   ;;  %s1316_s3 = inlined_call_operand.vmem [shape: bf16[8,32,4], index: 3, kind: input, shape index: {}]   ;;  %s1317_s4 = inlined_call_operand.vmem [shape: bf16[8,4,32], index: 4, kind: input, shape index: {}]   ;;  %s1318_s5 = inlined_call_operand.vmem [shape: f32[1,32], index: 5, kind: input, shape index: {}]   ;;  %s1319_s6 = inlined_call_operand.hbm [shape: f32[2,8,32], index: 6, kind: output, shape index: {}]  }
   0x1   :  { %13 = vsyncpa [#allocation4 + $0x1], 0  ;;  %s1133_s21 = smov 0   ;;  %s1135_s22 = smov 0  }
   0x2   :  { %s1137_s23 = smov 0   ;;  %s1139_s24 = smov 0  }
   0x3   :  { %s1141_s25 = smov 0   ;;  %s1143_s26 = smov 0  }
   0x4   :  { %s1145_s27 = smov 0   ;;  %s1147_s28 = smov 0  }
   0x5 LB: > { %1327 = sst [smem:[#allocation6_spill]] %s1065_s21  ;;  %s823_s29 = sadd.s32 4294967295, %s1093_s28   ;;  %s1093_s28 = sphi %s1147_s28, %s19_s28   ;;  %s1089_s27 = sphi %s1145_s27, %s1345_s27   ;;  %s1085_s26 = sphi %s1143_s26, %s1349_s26   ;;  %s1081_s25 = sphi %s1141_s25, %s1343_s25   ;;  %s1077_s24 = sphi %s1139_s24, %s1342_s24   ;;  %s1073_s23 = sphi %s1137_s23, %s1348_s23   ;;  %s1069_s22 = sphi %s1135_s22, %s1347_s22   ;;  %s1065_s21 = sphi %s1133_s21, %s1346_s21  }
   0x6   : > { %1328 = sst [smem:[#allocation7_spill]] %s1073_s23  ;;  %s824_s30 = sadd.s32 4294967294, %s1093_s28  }
   0x7   : > { %1329 = sst [smem:[#allocation8_spill]] %s1085_s26  ;;  %s28_s7 = sadd.s32 1, %s1085_s26 }
   0x8   : > { %1330 = sst [smem:[#allocation9_spill]] %s1089_s27  ;;  %p29_p0 = scmp.ge.s32.totalorder %s28_s7, 8 }
   0x9   : > { %s31_s8 = sadd.s32 1, %s1089_s27  ;;  %p199_p1 = scmp.ne.s32.totalorder %s1073_s23, %s1069_s22 }
   0xa   : > { %p200_p2 = scmp.eq.s32.totalorder %s823_s29, 15  ;;  %s1351_s7 = smov (%p29_p0, %s28_s7), 0 }
   0xb   : > { %1331 = sst [smem:[#allocation10_spill]] %s1351_s7  ;;  %s1353_s8 = smov (!%p29_p0, %s31_s8), %s1089_s27 }
   0xc   : > { %p1182_p3 = por %p200_p2, %p199_p1  ;;  %p205_p4 = scmp.ne.s32.totalorder %s1069_s22, %s1065_s21 }
   0xd   : > { %p33_p5 = scmp.ge.s32.totalorder %s1353_s8, 2  ;;  %p206_p6 = scmp.eq.s32.totalorder %s824_s30, 15 }
   0xe   : > { %p827_p7 = scmp.ge.s32.totalorder %s1093_s28, 1  ;;  %p265_p8 = scmp.lt.s32.totalorder %s1093_s28, 17 }
   0xf   : > { %s1355_s8 = smov (%p33_p5, %s1353_s8), 0  ;;  %p1192_p9 = por %p206_p6, %p205_p4 }
  0x10   : > { %1333 = sst [smem:[#allocation11_spill]] %s1355_s8  ;;  %p266_p10 = pnand %p827_p7, %p265_p8 }
  0x11   : > { %s1334_s10 = scalar_select %p1192_p9, 1, 0 }
  0x12   : > { %s186_s11 = ssub.s32 %s1089_s27, %s1355_s8  ;;  %s189_s12 = sadd.s32 1, %s1073_s23 }
  0x13   : > { %1335 = sst [smem:[#allocation12_spill]] %s1334_s10  ;;  %p187_p11 = scmp.eq.s32.totalorder %s186_s11, 0 }
  0x14   : > { %269 = sbr.rel (%p266_p10) target bundleno = 1257 (0x4e9), region = 44  ;;  %s1323_s14 = sand.u32 (!%p266_p10), 1, %s1069_s22  }
  0x15   : > { %s1200_s13 = scalar_select %p187_p11, %s1073_s23, %s189_s12  }
  0x16   : > { %p313_p12 = scmp.lt.s32.totalorder (!%p266_p10), %s1081_s25, 1  ;;  %s1206_s15 = sshll.u32 (!%p266_p10), %s1323_s14, 3 }
  0x17   : > { %1336 = sst [smem:[#allocation13_spill]] %s1200_s13  ;;  %p317_p13 = scmp.lt.s32.totalorder (!%p266_p10), %s1077_s24, 7 }
  0x18   : > { %p837_p0 = scmp.ne.s32.totalorder (!%p266_p10), %s1077_s24, 0 }
  0x1b   : > { %s314_s16 = scalar_select %p313_p12, %s1081_s25, 1 }
  0x1c   : > { %s318_s17 = scalar_select %p317_p13, %s1077_s24, 7 }
  0x1d   : > { %s829_s18 = sshll.u32 %s314_s16, 2  ;;  %340 = sbr.rel (%p837_p0) target bundleno = 36 (0x24), region = 48  ;;  %v838_v0 = vld [vmem:[%s1318_s5] ss:$0 sm:$0xff] (!%p837_p0)  ;;  %vm348_vm0 = vcmask (!%p837_p0), 261120  }
  0x1e   : > { %s316_s29 = scalar_lea.vmem %s1313_s0, %s829_s18  ;;  %s856_s30 = sshll.u32 %s318_s17, 4  ;;  %349 = vst.msk [vmem:[#allocation2] sm:$0xff] (!%p837_p0), %vm348_vm0, %v838_v0 }
  0x1f   : > { %s321_s8 = scalar_lea.vmem %s1314_s1, %s856_s30  ;;  %s326_s26 = scalar_lea.vmem %s1315_s2, %s856_s30 }
  0x20   : > { %s1223_s23 = scalar_lea.vmem %s1316_s3, %s856_s30  ;;  %s836_s10 = sshll.u32 %s318_s17, 1 }
  0x21   : > { %s1228_s19 = scalar_lea.vmem %s1317_s4, %s836_s10  ;;  %s312_s18 = scalar_lea.vmem [#allocation3], %s1206_s15 }
  0x24 PF: > { %v989_v1 = vld [vmem:[%s326_s26] sm:$0xff]   ;;  %v1095_v2 = vmov 0.0   ;;  %v990_v3 = vld [vmem:[%s326_s26 + $0x8] sm:$0xff]   ;;  %vm1096_vm1 = vmmov 0   ;;  %vm376_vm2 = vcmask 261120   ;;  %vm526_vm3 = vcmask 31744  }
  0x25   : > { %882 = vmatprep.subr.bf16.mxu1 %v1095_v2  ;;  %874 = vmatprep.subr.bf16.mxu0 %v1095_v2  ;;  %v991_v4 = vld [vmem:[%s321_s8] sm:$0xff]   ;;  %v992_v5 = vld [vmem:[%s321_s8 + $0x8] sm:$0xff]   ;;  %vm573_vm4 = vcmask 64512   ;;  %vm590_vm5 = vcmask 1043456   ;;  %vm639_vm6 = vcmask 1041408   ;;  %p851_p1 = scmp.ne.s32.totalorder %s1077_s24, 7 }
  0x26   : > { %883 = vmatpush3.bf16.msra.mxu1 %v989_v1  ;;  %886 = vmatprep.mubr.msk.bf16.mxu1 %vm1096_vm1, %v1095_v2  ;;  %v350_v6 = vld [vmem:[%s316_s29] sm:$0xf]  ;;  %v994_v19 = vld [vmem:[%s1223_s23 + $0x8] sm:$0xff]  }
  0x27   : > { %884 = vmatprep.subr.bf16.mxu1 %v1095_v2  ;;  %878 = vmatprep.mubr.msk.bf16.mxu0 %vm1096_vm1, %v1095_v2  ;;  %v993_v18 = vld [vmem:[%s1223_s23] sm:$0xff]  }
  0x28   : > { %875 = vmatpush3.bf16.msra.mxu0 %v991_v4  ;;  %v363_v36 = vld [vmem:[%s1228_s19] sm:$0x3] }
  0x29   : > { %876 = vmatprep.subr.bf16.mxu0 %v1095_v2  ;;  %v641_v37 = vsel %vm639_vm6, %v363_v36, 0  ;;  %v634_v47 = vld [vmem:[#allocation2] sm:$0xff] }
  0x2a   : > { %885 = vmatpush3.bf16.msra.mxu1 %v990_v3 }
  0x2b   : > { %898 = vmatprep.subr.bf16.mxu1 %v1095_v2 }
  0x2c   : > { %877 = vmatpush3.bf16.msra.mxu0 %v992_v5 }
  0x2d   : > { %887 = vmatmul.mubr.msk.bf16.vlgmr.msra.gmra.mrb[0].mxu1 %vm376_vm2, %v350_v6  ;;  %890 = vmatprep.subr.bf16.mxu0 %v1095_v2 }
  0x2e   : > { %900 = vmatprep.mubr.msk.bf16.mxu1 %vm1096_vm1, %v1095_v2 }
  0x2f   : > { %879 = vmatmul.mubr.msk.bf16.vlgmr.msra.gmra.mrb[0].mxu0 %vm376_vm2, %v350_v6 }
  0x30   : > { %894 = vmatprep.mubr.msk.bf16.mxu0 %vm1096_vm1, %v1095_v2  ;;  %891 = vmatpush3.bf16.msra.mxu0 %v993_v18 }
  0x31   : > { %892 = vmatprep.subr.bf16.mxu0 %v1095_v2 }
  0x34   : > { %893 = vmatpush3.bf16.msra.mxu0 %v994_v19 }
  0x35   : > { %904 = vmatprep.subr.bf16.mxu0 %v1095_v2 }
  0x37   : > { %895 = vmatmul.mubr.msk.bf16.vlgmr.msra.gmra.mrb[4].mxu0 %vm376_vm2, %v350_v6 }
  0x38   : > { %906 = vmatprep.mubr.msk.bf16.mxu0 %vm1096_vm1, %v1095_v2 }
 0x100   : > { %v466_v7 = vpop.f32.mrb[0].mxu1 }
 0x101   : > { %v525_v8 = vpack.c.bf16 %v466_v7, %v466_v7  ;;  %v888_v9 = vpop.f32.mrb[1].mxu1 }
 0x102   : > { %v469_v10 = vpop.f32.mrb[2].mxu1  ;;  %v414_v11 = vpop.f32.mrb[0].mxu0 }
 0x103   : > { %v531_v12 = vsel %vm526_vm3, %v525_v8, 0  ;;  %v889_v13 = vpop.f32.mrb[3].mxu1  ;;  %v880_v14 = vpop.f32.mrb[1].mxu0  ;;  %v524_v17 = vpack.c.bf16 %v414_v11, %v414_v11 }
 0x104   : > { %899 = vmatpush3.bf16.xpose.msra.mxu1 %v531_v12  ;;  %v417_v15 = vpop.f32.mrb[2].mxu0 }
 0x105   : > { %v881_v16 = vpop.f32.mrb[3].mxu0  ;;  %910 = vmatprep.subr.bf16.mxu1 %v1095_v2 }
 0x10a   : > { %v518_v30 = vpop.f32.mrb[4].mxu0 }
 0x10b   : > { %901 = vmatmul.mubr.msk.bf16.vlgmr.msra.gmra.mrb[4].mxu1 %vm526_vm3, %v524_v17  ;;  %v896_v31 = vpop.f32.mrb[5].mxu0  ;;  %v586_v34 = vpack.c.bf16 %v518_v30, %v518_v30 }
 0x10c   : > { %912 = vmatprep.mubr.msk.bf16.mxu1 %vm1096_vm1, %v1095_v2  ;;  %v521_v32 = vpop.f32.mrb[6].mxu0  ;;  %911 = vmatpush3.bf16.msra.mxu1 %v641_v37 }
 0x10d   : > { %v897_v33 = vpop.f32.mrb[7].mxu0  ;;  %v592_v35 = vsel %vm590_vm5, %v586_v34, 0 }
 0x10e   : > { %905 = vmatpush3.bf16.msra.mxu0 %v592_v35 }
 0x1de   : > { %v567_v20 = vpop.f32.mrb[4].mxu1 }
 0x1df   : > { %v902_v21 = vpop.f32.mrb[5].mxu1  ;;  %v574_v22 = vsel %vm573_vm4, %v567_v20, -inf }
 0x1e0   : > { %575 = vmax.xlane.f32.xlu0 %v574_v22  ;;  %v570_v23 = vpop.f32.mrb[6].mxu1 }
 0x1e1   : > { %v903_v24 = vpop.f32.mrb[7].mxu1 }
 0x26d   : > { %v576_v25 = vpop.xlane.xlu0 %575 }
 0x26e   : > { %v577_v26 = vsub.f32 %v567_v20, %v576_v25 }
 0x270   : > { %v578_v27 = vmul.f32 1.442695, %v577_v26 }
 0x272   : > { %995 = vpow2.f32 %v578_v27 }
 0x27c   : > { %v996_v28 = vpop.eup %995 }
 0x27d   : > { %v580_v29 = vsel %vm573_vm4, %v996_v28, 0.0 }
 0x27e   : > { %581 = vadd.xlane.f32.xlu0 %v580_v29 }
 0x30b   : > { %v582_v38 = vpop.xlane.xlu0 %581 }
 0x30c   : > { %997 = vrcp.f32 %v582_v38 }
 0x316   : > { %v998_v39 = vpop.eup %997 }
 0x317   : > { %v584_v40 = vmul.f32 %v998_v39, %v996_v28 }
 0x319   : > { %v585_v41 = vpack.c.bf16 %v584_v40, %v584_v40 }
 0x31b   : > { %907 = vmatmul.mubr.msk.bf16.vlgmr.msra.gmra.mrb[8].mxu0 %vm573_vm4, %v585_v41 }
 0x3ee   : > { %v628_v42 = vpop.f32.mrb[8].mxu0 }
 0x3ef   : > { %v635_v43 = vpack.c.bf16 %v628_v42, %v628_v42  ;;  %v908_v44 = vpop.f32.mrb[9].mxu0 }
 0x3f0   : > { %v631_v45 = vpop.f32.mrb[10].mxu0 }
 0x3f1   : > { %v909_v46 = vpop.f32.mrb[11].mxu0  ;;  %913 = vmatmul.mubr.msk.bf16.vlgmr.msra.gmra.mrb[8].mxu1 %vm526_vm3, %v635_v43 }
 0x4c1   : > { %688 = sbr.rel (%p851_p1) target bundleno = 1232 (0x4d0), region = 52 }
 0x4c4   : > { %v677_v48 = vpop.f32.mrb[8].mxu1 }
 0x4c5   : > { %v683_v49 = vadd.f32 %v677_v48, %v634_v47  ;;  %v914_v50 = vpop.f32.mrb[9].mxu1 }
 0x4c6   : > { %v680_v51 = vpop.f32.mrb[10].mxu1 }
 0x4c7   : > { %684 = vst.msk [vmem:[#allocation2] sm:$0xff] %vm376_vm2, %v683_v49  ;;  %v915_v52 = vpop.f32.mrb[11].mxu1 }
 0x4ce   : > { %v689_v53 = vld [vmem:[#allocation2] sm:$0xff] }
 0x4cf   : > { %690 = vst.msk [vmem:[%s312_s18] sm:$0xff] %vm376_vm2, %v689_v53 }
 0x4d0 PF: > { %s853_s21 = sshll.u32 %s1081_s25, 7  ;;  %s705_s7 = sshll.u32 %s312_s18, 4  ;;  %s706_s7 = int_to_ptr.vmem [resolvable:$true] %s705_s7 }
 0x4d1   : > { %s1262_s27 = scalar_lea.hbm %s1319_s6, %s853_s21  ;;  %s1337_s24 = sand.u32 1, %s1069_s22  }
 0x4d2   : > { %s692_s8 = scalar_lea.sflag [#allocation4], %s1337_s24  ;;  %s999_s10 = scalar_lea.vmem %s706_s7, 128 }
 0x4d3   : > { %p1000_p2 = scmp.ne.s32.totalorder %s706_s7, %s999_s10  ;;  %s1097_s13 = smov [#allocation3]  }
 0x4d4   : > { %s1003_s14 = sshll.u32 %s1097_s13, 4  ;;  %s1004_s14 = int_to_ptr.vmem [resolvable:$false] %s1003_s14 }
 0x4d5   : > { %p1001_p4 = pnand %p1000_p2, %p1182_p3  ;;  %s1005_s17 = scalar_lea.vmem %s1004_s14, 256 }
 0x4d6   : > { %p1006_p6 = scmp.lt.s32.totalorder %s706_s7, %s1004_s14  ;;  %p1007_p7 = scmp.lt.s32.totalorder %s1005_s17, %s999_s10 }
 0x4d7   : > { %p1002_p5 = pneg %p1001_p4 }
 0x4d8   : > { %p1008_p8 = por %p1007_p7, %p1006_p6 }
 0x4da   : > { %p1009_p10 = pnand %p1008_p8, %p1002_p5 }
 0x4dc   : > { %1012 = shalt.err (!%p1009_p10)
}
 0x4dd   : > { %s1013_s25 = scalar_lea.hbm %s1262_s27, 128  ;;  %s1017_s30 = scalar_lea.hbm %s1319_s6, 256 }
 0x4de   : > { %p1014_p11 = scmp.ne.s32.totalorder %s1262_s27, %s1013_s25  ;;  %p1018_p0 = scmp.lt.u32.totalorder %s1262_s27, %s1319_s6 }
 0x4df   : > { %p1019_p1 = scmp.lt.u32.totalorder %s1017_s30, %s1013_s25  ;;  %p1021_p4 = scmp.lt.u32.totalorder %s1013_s25, %s1262_s27 }
 0x4e0   : > { %p1015_p12 = pnand %p1014_p11, %p1182_p3 }
 0x4e1   : > { %p1020_p2 = por %p1019_p1, %p1018_p0 }
 0x4e2   : > { %p1016_p13 = pneg %p1015_p12 }
 0x4e3   : > { %p1022_p5 = por %p1021_p4, %p1020_p2 }
 0x4e5   : > { %p1023_p6 = pnand %p1022_p5, %p1016_p13 }
 0x4e7   : > { %1026 = shalt.err (!%p1023_p6)
}
 0x4e8   : > { %916 = dma.vmem_to_hbm [thread:$0]  (%p1182_p3), %s706_s7, 128, %s1262_s27, %s692_s8  }
 0x4e9 PF: > { %s1338_s19 = sld [smem:[#allocation6_spill]]  ;;  %p922_p7 = scmp.ge.s32.totalorder %s1093_s28, 2 }
 0x4eb   : > { %p919_p8 = pnand %p922_p7, %p1192_p9 }
 0x4ef   : > { %s717_s20 = sand.u32 1, %s1338_s19  }
 0x4f0   : > { %s718_s11 = scalar_lea.sflag [#allocation4], %s717_s20 }
 0x4f1   : > { %1060 = dma.done.wait (!%p919_p8), %s718_s11, 128  }
 0x4f2   : > { %1062 = vsyncadd (!%p919_p8), %s718_s11, 4294967168  ;;  %s19_s28 = sadd.s32 1, %s1093_s28   ;;  %s1340_s23 = sld [smem:[#allocation7_spill]] }
 0x4f3   : > { %p16_p10 = scmp.ge.s32.totalorder %s19_s28, 18   ;;  %s1341_s26 = sld [smem:[#allocation13_spill]] }
 0x4f4   : > { %s1342_s24 = sld [smem:[#allocation8_spill]]  ;;  %s1343_s25 = sld [smem:[#allocation9_spill]] }
 0x4f5   : > { %s1344_s9 = sld [smem:[#allocation10_spill]]  ;;  %s1345_s27 = sld [smem:[#allocation11_spill]] }
 0x4f6   : > { %s1346_s21 = smov %s1069_s22  ;;  %18 = sbr.rel (!%p16_p10) target bundleno = 5 (0x5), region = 99 }
 0x4f8   : > { %s1347_s22 = smov %s1340_s23 }
 0x4f9   : > { %s1348_s23 = smov %s1341_s26 }
 0x4fb   : > { %s1349_s26 = smov %s1344_s9 }
 0x4fd   :  { %723 = vsyncpa [#allocation4], 1 }
 0x4fe   :  { %725 = vsyncpa [#allocation4 + $0x1], 1 }

</bundles_post_ra>
